<compile_context>
chip_gen: v7x
topology: tpu7x:2x2x1
jax: 0.10.0
libtpu: 0.0.40
codegen_flags: <defaults>
</compile_context>

<pallas_src>
import jax
import jax.numpy as jnp
from jax import lax
from jax.experimental import pallas as pl
from jax.experimental.pallas import tpu as pltpu

EPS = 1e-5
_COMPUTE_DTYPE = jnp.bfloat16      # MXU operand dtype (accumulation stays f32)


# ---------------------------------------------------------------------------
# Hardware queries (safe fallbacks so the wrapper never hard-fails).
# ---------------------------------------------------------------------------
def _vmem_capacity_bytes():
    try:
        info = pltpu.get_tpu_info()
        cap = getattr(info, "vmem_capacity_bytes", None)
        if cap:
            return int(cap)
    except Exception:
        pass
    return 64 * 1024 * 1024          # conservative default (v7x per-TC VMEM)


def _num_tensorcores():
    try:
        info = pltpu.get_tpu_info()
        for name in ("num_cores", "tensorcores_per_chip", "core_count"):
            v = getattr(info, name, None)
            if isinstance(v, int) and v > 0:
                return v
    except Exception:
        pass
    return 1                          # v5e / v6e: one TensorCore per chip


# ---------------------------------------------------------------------------
# Tiling heuristics.
# ---------------------------------------------------------------------------
def _choose_ffn_chunk(H, max_chunk):
    """Largest chunk <= max_chunk dividing H, preferring multiples of 128."""
    if H <= max_chunk:
        return H
    c = (max_chunk // 128) * 128
    while c >= 128:
        if H % c == 0:
            return c
        c -= 128
    for c in range(min(max_chunk, H), 0, -1):   # no 128-multiple divisor
        if H % c == 0:
            return c
    return H


def _choose_block_b(B, S, D, HB, x_itemsize, act_budget, num_cores):
    """Largest batch tile whose activations fit the budget; keep >=num_cores
    grid steps only when the chip actually has more than one TensorCore."""
    def act_bytes(bb):
        rows = bb * S
        io = 2 * 2 * rows * D * x_itemsize     # double-buffered x / out tiles
        proj = rows * 3 * D * 6                 # q/k/v (f32 result + bf16 copy)
        attn = 3 * bb * S * S * 4               # scores / p / attn (f32)
        misc = rows * D * 4 * 5                 # residual, h, context, ff, out
        ffn = rows * HB * 6                     # hidden chunk (f32 + bf16)
        return io + proj + attn + misc + ffn

    divisors = [d for d in range(1, B + 1) if B % d == 0]
    fitting = [d for d in divisors if act_bytes(d) <= act_budget] or [1]
    block_b = max(fitting)                      # fewest grid steps by default
    if num_cores > 1:
        multi = [d for d in fitting if B // d >= num_cores and d * S >= 128]
        if multi:
            block_b = max(multi)
    return block_b


# ---------------------------------------------------------------------------
# Kernel bodies.
# ---------------------------------------------------------------------------
def _layernorm(h, gamma, beta):
    # f32 statistics, biased variance, eps inside rsqrt (matches nn.LayerNorm).
    mean = jnp.mean(h, axis=-1, keepdims=True)
    centered = h - mean
    var = jnp.mean(centered * centered, axis=-1, keepdims=True)
    return centered * lax.rsqrt(var + EPS) * gamma + beta


def _attention_and_norm1(x_ref, wq_ref, wk_ref, wv_ref, bq_ref, bk_ref, bv_ref,
                         wo_ref, bo_ref, g1_ref, be1_ref):
    Bt, S, D = x_ref.shape
    rows = Bt * S
    inv_scale = 1.0 / (D ** 0.5)

    x_f32 = x_ref[...].astype(jnp.float32)                 # residual path (f32)
    x2 = x_f32.reshape(rows, D).astype(_COMPUTE_DTYPE)     # bf16 MXU operand

    # Three separate projections (no lane-dim slicing of a fused QKV result).
    q = (jnp.dot(x2, wq_ref[...], preferred_element_type=jnp.float32)
         + bq_ref[...]).reshape(Bt, S, D).astype(_COMPUTE_DTYPE)
    k = (jnp.dot(x2, wk_ref[...], preferred_element_type=jnp.float32)
         + bk_ref[...]).reshape(Bt, S, D).astype(_COMPUTE_DTYPE)
    v = (jnp.dot(x2, wv_ref[...], preferred_element_type=jnp.float32)
         + bv_ref[...]).reshape(Bt, S, D).astype(_COMPUTE_DTYPE)

    # Contract over D of both operands: no explicit k transpose is built;
    # Mosaic handles the transposed-RHS dot natively on the MXU.
    scores = jnp.einsum("bqd,bkd->bqk", q, k,
                        preferred_element_type=jnp.float32) * inv_scale
    scores = scores - jnp.max(scores, axis=-1, keepdims=True)
    p = jnp.exp(scores)
    attn = p * pl.reciprocal(jnp.sum(p, axis=-1, keepdims=True), approx=True)
    # attention dropout: eval-mode identity.

    context = jnp.einsum("bqk,bkd->bqd", attn.astype(_COMPUTE_DTYPE), v,
                         preferred_element_type=jnp.float32)
    attn_out = jnp.dot(context.reshape(rows, D).astype(_COMPUTE_DTYPE),
                       wo_ref[...], preferred_element_type=jnp.float32) + bo_ref[...]

    return _layernorm(x_f32.reshape(rows, D) + attn_out, g1_ref[...], be1_ref[...])


def _make_resident_kernel(n_chunks):
    """FFN weights VMEM-resident, chunked over the hidden dim with fori_loop."""
    def kernel(x_ref, wq_ref, wk_ref, wv_ref, bq_ref, bk_ref, bv_ref,
               wo_ref, bo_ref, g1_ref, be1_ref,
               w1_ref, b1_ref, w2_ref, b2_ref, g2_ref, be2_ref, o_ref):
        Bt, S, D = x_ref.shape
        rows = Bt * S

        h = _attention_and_norm1(x_ref, wq_ref, wk_ref, wv_ref,
                                 bq_ref, bk_ref, bv_ref, wo_ref, bo_ref,
                                 g1_ref, be1_ref)
        h_bf = h.astype(_COMPUTE_DTYPE)

        def ff_chunk(w1c, b1c, w2c):
            hid = jnp.dot(h_bf, w1c, preferred_element_type=jnp.float32) + b1c
            hid = jnp.maximum(hid, 0.0)          # ReLU; dropout = identity (eval)
            return jnp.dot(hid.astype(_COMPUTE_DTYPE), w2c,
                           preferred_element_type=jnp.float32)

        if n_chunks == 1:
            ff = ff_chunk(w1_ref[0], b1_ref[0], w2_ref[0])
        else:
            def body(c, acc):
                return acc + ff_chunk(w1_ref[c], b1_ref[c], w2_ref[c])
            ff = lax.fori_loop(0, n_chunks, body,
                               jnp.zeros((rows, D), jnp.float32),
                               unroll=(n_chunks <= 8))
        ff = ff + b2_ref[...]

        out = _layernorm(h + ff, g2_ref[...], be2_ref[...])
        o_ref[...] = out.reshape(Bt, S, D).astype(o_ref.dtype)

    return kernel


def _make_streamed_kernel(n_chunks):
    """FFN weights stay in HBM; HB-chunks are manually double-buffered."""
    def kernel(x_ref, wq_ref, wk_ref, wv_ref, bq_ref, bk_ref, bv_ref,
               wo_ref, bo_ref, g1_ref, be1_ref,
               w1_hbm, b1_ref, w2_hbm, b2_ref, g2_ref, be2_ref, o_ref,
               w1_buf, w2_buf, dma_sem, ff_acc):
        Bt, S, D = x_ref.shape

        def start_fetch(c, slot):
            pltpu.make_async_copy(w1_hbm.at[c], w1_buf.at[slot],
                                  dma_sem.at[0, slot]).start()
            pltpu.make_async_copy(w2_hbm.at[c], w2_buf.at[slot],
                                  dma_sem.at[1, slot]).start()

        def wait_fetch(slot):
            pltpu.make_async_copy(w1_hbm.at[0], w1_buf.at[slot],
                                  dma_sem.at[0, slot]).wait()
            pltpu.make_async_copy(w2_hbm.at[0], w2_buf.at[slot],
                                  dma_sem.at[1, slot]).wait()

        # Prefetch the first W1/W2 chunk; the DMA overlaps the attention math.
        start_fetch(0, 0)

        h = _attention_and_norm1(x_ref, wq_ref, wk_ref, wv_ref,
                                 bq_ref, bk_ref, bv_ref, wo_ref, bo_ref,
                                 g1_ref, be1_ref)
        h_bf = h.astype(_COMPUTE_DTYPE)

        ff_acc[...] = jnp.zeros_like(ff_acc)

        @pl.loop(0, n_chunks)
        def _(c):
            slot = c & 1
            wait_fetch(slot)

            @pl.when(c + 1 < n_chunks)
            def _():
                start_fetch(c + 1, 1 - slot)

            hid = jnp.dot(h_bf, w1_buf[slot],
                          preferred_element_type=jnp.float32) + b1_ref[c]
            hid = jnp.maximum(hid, 0.0)          # ReLU; dropout = identity (eval)
            ff_acc[...] += jnp.dot(hid.astype(_COMPUTE_DTYPE), w2_buf[slot],
                                   preferred_element_type=jnp.float32)

        ff = ff_acc[...] + b2_ref[...]
        out = _layernorm(h + ff, g2_ref[...], be2_ref[...])
        o_ref[...] = out.reshape(Bt, S, D).astype(o_ref.dtype)

    return kernel


# ---------------------------------------------------------------------------
# Wrapper.
# ---------------------------------------------------------------------------
def transformer_encoder_block(x, params, *, block_b=None,
                              stream_ffn_weights=None, ffn_chunk=None):
    B, S, D = x.shape
    H = params["w1"].shape[1]
    cw, f32 = _COMPUTE_DTYPE, jnp.float32

    # --- chip-aware VMEM budget --------------------------------------------
    vmem_cap = _vmem_capacity_bytes()
    num_cores = _num_tensorcores()
    vmem_limit = max(32 * 1024 * 1024,
                     min(int(vmem_cap * 0.85), 112 * 1024 * 1024))
    budget = vmem_limit - 6 * 1024 * 1024        # headroom for Mosaic scratch

    attn_w_bytes = 4 * D * D * 2                 # Wq/Wk/Wv/Wo (bf16)
    ffn_w_bytes = 2 * D * H * 2                  # W1/W2 (bf16)
    resident_w_bytes = 2 * (attn_w_bytes + ffn_w_bytes)   # double-buffered

    if stream_ffn_weights is None:
        # Stream W1/W2 from HBM when keeping them resident would eat more than
        # half the budget (typical for large D/H on v7x's 64 MiB per-TC VMEM).
        stream_ffn_weights = resident_w_bytes > budget // 2

    if ffn_chunk is None:
        HB = _choose_ffn_chunk(H, 1024 if stream_ffn_weights else 2048)
    else:
        HB = ffn_chunk
    assert H % HB == 0, "ffn_chunk must divide the FFN hidden dim"
    n_chunks = H // HB

    if stream_ffn_weights:
        weight_vmem = 2 * attn_w_bytes + 2 * 2 * D * HB * 2   # + chunk buffers
    else:
        weight_vmem = resident_w_bytes

    if block_b is None:
        block_b = _choose_block_b(B, S, D, HB, x.dtype.itemsize,
                                  max(budget - weight_vmem, 1), num_cores)
    assert B % block_b == 0
    rows = block_b * S

    # --- operands (FFN weights pre-chunked along a leading axis) ------------
    w1_c = params["w1"].astype(cw).reshape(D, n_chunks, HB).transpose(1, 0, 2)
    b1_c = params["b1"].astype(f32).reshape(n_chunks, 1, HB)
    w2_c = params["w2"].astype(cw).reshape(n_chunks, HB, D)

    operands = (
        x,
        params["wq"].astype(cw), params["wk"].astype(cw), params["wv"].astype(cw),
        params["bq"].astype(f32), params["bk"].astype(f32), params["bv"].astype(f32),
        params["wo"].astype(cw), params["bo"].astype(f32),
        params["gamma1"].astype(f32), params["beta1"].astype(f32),
        w1_c, b1_c, w2_c, params["b2"].astype(f32),
        params["gamma2"].astype(f32), params["beta2"].astype(f32),
    )

    def const_spec(shape):
        # Block index never changes across the grid -> tile fetched once.
        n = len(shape)
        return pl.BlockSpec(shape, lambda b: (0,) * n)

    x_spec = pl.BlockSpec((block_b, S, D), lambda b: (b, 0, 0))
    o_spec = pl.BlockSpec((block_b, S, D), lambda b: (b, 0, 0))

    front_specs = [
        x_spec,
        const_spec((D, D)), const_spec((D, D)), const_spec((D, D)),   # Wq,Wk,Wv
        const_spec((1, D)), const_spec((1, D)), const_spec((1, D)),   # bq,bk,bv
        const_spec((D, D)), const_spec((1, D)),                       # Wo, bo
        const_spec((1, D)), const_spec((1, D)),                       # gamma1, beta1
    ]
    b1_spec = const_spec((n_chunks, 1, HB))
    tail_specs = [const_spec((1, D)),                                 # b2
                  const_spec((1, D)), const_spec((1, D))]             # gamma2, beta2

    if stream_ffn_weights:
        kernel = _make_streamed_kernel(n_chunks)
        in_specs = (front_specs
                    + [pl.BlockSpec(memory_space=pl.ANY),             # W1 (HBM)
                       b1_spec,
                       pl.BlockSpec(memory_space=pl.ANY)]             # W2 (HBM)
                    + tail_specs)
        scratch_shapes = [
            pltpu.VMEM((2, D, HB), cw),            # W1 chunk double buffer
            pltpu.VMEM((2, HB, D), cw),            # W2 chunk double buffer
            pltpu.SemaphoreType.DMA((2, 2)),
            pltpu.VMEM((rows, D), jnp.float32),    # FFN accumulator
        ]
    else:
        kernel = _make_resident_kernel(n_chunks)
        in_specs = (front_specs
                    + [const_spec((n_chunks, D, HB)),
                       b1_spec,
                       const_spec((n_chunks, HB, D))]
                    + tail_specs)
        scratch_shapes = []

    cost = pl.CostEstimate(
        flops=int(2 * B * S * D * (4 * D + 2 * H) + 4 * B * S * S * D),
        transcendentals=int(B * S * S),
        bytes_accessed=int(2 * B * S * D * x.dtype.itemsize
                           + (4 * D * D + 2 * D * H) * 2
                           + (9 * D + 2 * H) * 4),
    )

    return pl.pallas_call(
        kernel,
        out_shape=jax.ShapeDtypeStruct((B, S, D), x.dtype),
        grid_spec=pltpu.PrefetchScalarGridSpec(
            num_scalar_prefetch=0,
            grid=(B // block_b,),
            in_specs=in_specs,
            out_specs=o_spec,
            scratch_shapes=scratch_shapes,
        ),
        compiler_params=pltpu.CompilerParams(
            dimension_semantics=("parallel",),
            vmem_limit_bytes=vmem_limit,
        ),
        cost_estimate=cost,
    )(*operands)


# ---------------------------------------------------------------------------
# Pure-JAX f32 reference (matches the PyTorch module in eval mode).
# ---------------------------------------------------------------------------
def encoder_block_reference(x, params):
    def ln(h, g, b):
        m = jnp.mean(h, -1, keepdims=True)
        v = jnp.mean((h - m) ** 2, -1, keepdims=True)
        return (h - m) / jnp.sqrt(v + EPS) * g + b

    D = x.shape[-1]
    q = x @ params["wq"] + params["bq"]
    k = x @ params["wk"] + params["bk"]
    v = x @ params["wv"] + params["bv"]
    s = jnp.einsum("bqd,bkd->bqk", q, k) / (D ** 0.5)
    a = jax.nn.softmax(s, axis=-1)
    ctx = jnp.einsum("bqk,bkd->bqd", a, v)
    attn_out = ctx @ params["wo"] + params["bo"]
    h = ln(x + attn_out, params["gamma1"], params["beta1"])
    ff = jnp.maximum(h @ params["w1"] + params["b1"], 0.0) @ params["w2"] + params["b2"]
    return ln(h + ff, params["gamma2"], params["beta2"])


def init_params(key, embed_dim, expansion_factor=4, dtype=jnp.float32):
    H = embed_dim * expansion_factor
    ks = jax.random.split(key, 6)

    def lin(k, fan_in, fan_out):
        kw, kb = jax.random.split(k)
        bound = 1.0 / (fan_in ** 0.5)
        w = jax.random.uniform(kw, (fan_in, fan_out), dtype, -bound, bound)
        b = jax.random.uniform(kb, (1, fan_out), dtype, -bound, bound)
        return w, b

    wq, bq = lin(ks[0], embed_dim, embed_dim)
    wk, bk = lin(ks[1], embed_dim, embed_dim)
    wv, bv = lin(ks[2], embed_dim, embed_dim)
    wo, bo = lin(ks[3], embed_dim, embed_dim)
    w1, b1 = lin(ks[4], embed_dim, H)
    w2, b2 = lin(ks[5], H, embed_dim)

    return dict(
        wq=wq, bq=bq, wk=wk, bk=bk, wv=wv, bv=bv, wo=wo, bo=bo,
        gamma1=jnp.ones((1, embed_dim), dtype), beta1=jnp.zeros((1, embed_dim), dtype),
        w1=w1, b1=b1, w2=w2, b2=b2,
        gamma2=jnp.ones((1, embed_dim), dtype), beta2=jnp.zeros((1, embed_dim), dtype),
    )


if __name__ == "__main__":
    B, S, D = 2, 8, 32
    key = jax.random.PRNGKey(0)
    kx, kp1, kp2 = jax.random.split(key, 3)
    x = jax.random.normal(kx, (B, S, D), jnp.float32)

    # 1) Default path: weights VMEM-resident, single FFN chunk.
    params = init_params(kp1, D, expansion_factor=4)           # H = 128
    out = transformer_encoder_block(x, params)
    jax.block_until_ready(out)
    assert out.shape == (B, S, D)
    ref = encoder_block_reference(x, params)
    err = float(jnp.max(jnp.abs(out - ref)))
    assert err < 0.15, f"resident path mismatch vs reference: {err}"

    # 2) Resident path with multiple FFN chunks (exercises the fori_loop).
    params_big = init_params(kp2, D, expansion_factor=8)       # H = 256
    ref_big = encoder_block_reference(x, params_big)
    out_r = transformer_encoder_block(x, params_big, ffn_chunk=128)
    jax.block_until_ready(out_r)
    err_r = float(jnp.max(jnp.abs(out_r - ref_big)))
    assert err_r < 0.15, f"chunked resident path mismatch vs reference: {err_r}"

    # 3) HBM-streamed FFN weights (the path large D/H uses on v7x), forced at
    #    small shapes with two hidden chunks so it stays covered by this test.
    out_s = transformer_encoder_block(x, params_big,
                                      stream_ffn_weights=True, ffn_chunk=128)
    jax.block_until_ready(out_s)
    err_s = float(jnp.max(jnp.abs(out_s - ref_big)))
    assert err_s < 0.15, f"streamed path mismatch vs reference: {err_s}"

    print("KERNEL_OK")
</pallas_src>

<mosaic_0001>
module attributes {stable_mosaic.version = 11 : i64} {
  func.func @kernel(%arg0: i32, %arg1: memref<2x8x32xf32, #tpu.memory_space<vmem>>, %arg2: memref<32x32xbf16, #tpu.memory_space<vmem>>, %arg3: memref<32x32xbf16, #tpu.memory_space<vmem>>, %arg4: memref<32x32xbf16, #tpu.memory_space<vmem>>, %arg5: memref<1x32xf32, #tpu.memory_space<vmem>>, %arg6: memref<1x32xf32, #tpu.memory_space<vmem>>, %arg7: memref<1x32xf32, #tpu.memory_space<vmem>>, %arg8: memref<32x32xbf16, #tpu.memory_space<vmem>>, %arg9: memref<1x32xf32, #tpu.memory_space<vmem>>, %arg10: memref<1x32xf32, #tpu.memory_space<vmem>>, %arg11: memref<1x32xf32, #tpu.memory_space<vmem>>, %arg12: memref<1x32x128xbf16, #tpu.memory_space<vmem>>, %arg13: memref<1x1x128xf32, #tpu.memory_space<vmem>>, %arg14: memref<1x128x32xbf16, #tpu.memory_space<vmem>>, %arg15: memref<1x32xf32, #tpu.memory_space<vmem>>, %arg16: memref<1x32xf32, #tpu.memory_space<vmem>>, %arg17: memref<1x32xf32, #tpu.memory_space<vmem>>, %arg18: memref<2x8x32xf32, #tpu.memory_space<vmem>>) attributes {dimension_semantics = [#tpu.dimension_semantics<parallel>], iteration_bounds = array<i64: 1>, scalar_prefetch = 0 : i64, scratch_operands = 0 : i64, tpu.core_type = #tpu.core_type<tc>, window_params = [{transform_indices = @transform_0, window_bounds = array<i64: 2, 8, 32>}, {pipeline_mode = #tpu.pipeline_mode<synchronous>, transform_indices = @transform_1, window_bounds = array<i64: 32, 32>}, {pipeline_mode = #tpu.pipeline_mode<synchronous>, transform_indices = @transform_2, window_bounds = array<i64: 32, 32>}, {pipeline_mode = #tpu.pipeline_mode<synchronous>, transform_indices = @transform_3, window_bounds = array<i64: 32, 32>}, {pipeline_mode = #tpu.pipeline_mode<synchronous>, transform_indices = @transform_4, window_bounds = array<i64: 1, 32>}, {pipeline_mode = #tpu.pipeline_mode<synchronous>, transform_indices = @transform_5, window_bounds = array<i64: 1, 32>}, {pipeline_mode = #tpu.pipeline_mode<synchronous>, transform_indices = @transform_6, window_bounds = array<i64: 1, 32>}, {pipeline_mode = #tpu.pipeline_mode<synchronous>, transform_indices = @transform_7, window_bounds = array<i64: 32, 32>}, {pipeline_mode = #tpu.pipeline_mode<synchronous>, transform_indices = @transform_8, window_bounds = array<i64: 1, 32>}, {pipeline_mode = #tpu.pipeline_mode<synchronous>, transform_indices = @transform_9, window_bounds = array<i64: 1, 32>}, {pipeline_mode = #tpu.pipeline_mode<synchronous>, transform_indices = @transform_10, window_bounds = array<i64: 1, 32>}, {pipeline_mode = #tpu.pipeline_mode<synchronous>, transform_indices = @transform_11, window_bounds = array<i64: 1, 32, 128>}, {pipeline_mode = #tpu.pipeline_mode<synchronous>, transform_indices = @transform_12, window_bounds = array<i64: 1, 1, 128>}, {pipeline_mode = #tpu.pipeline_mode<synchronous>, transform_indices = @transform_13, window_bounds = array<i64: 1, 128, 32>}, {pipeline_mode = #tpu.pipeline_mode<synchronous>, transform_indices = @transform_14, window_bounds = array<i64: 1, 32>}, {pipeline_mode = #tpu.pipeline_mode<synchronous>, transform_indices = @transform_15, window_bounds = array<i64: 1, 32>}, {pipeline_mode = #tpu.pipeline_mode<synchronous>, transform_indices = @transform_16, window_bounds = array<i64: 1, 32>}, {transform_indices = @transform_17, window_bounds = array<i64: 2, 8, 32>}]} {
    %c0 = arith.constant 0 : index
    %c0_0 = arith.constant 0 : index
    %c0_1 = arith.constant 0 : index
    %0 = vector.load %arg1[%c0, %c0_0, %c0_1] : memref<2x8x32xf32, #tpu.memory_space<vmem>>, vector<2x8x32xf32>
    %1 = vector.shape_cast %0 : vector<2x8x32xf32> to vector<16x32xf32>
    %2 = arith.truncf %1 : vector<16x32xf32> to vector<16x32xbf16>
    %c0_2 = arith.constant 0 : index
    %c0_3 = arith.constant 0 : index
    %3 = vector.load %arg2[%c0_2, %c0_3] : memref<32x32xbf16, #tpu.memory_space<vmem>>, vector<32x32xbf16>
    %cst = arith.constant dense<0.000000e+00> : vector<16x32xf32>
    %4 = tpu.matmul %2, %3, %cst {dimension_numbers = #tpu.dot_dimension_numbers<[1], [0], [0], [1], [0, 0, 1, 1], [], []>} : vector<16x32xbf16>, vector<32x32xbf16>, vector<16x32xf32> -> vector<16x32xf32>
    %c0_4 = arith.constant 0 : index
    %c0_5 = arith.constant 0 : index
    %5 = vector.load %arg5[%c0_4, %c0_5] : memref<1x32xf32, #tpu.memory_space<vmem>>, vector<1x32xf32>
    %6 = vector.broadcast %5 : vector<1x32xf32> to vector<16x32xf32>
    %7 = arith.addf %4, %6 : vector<16x32xf32>
    %8 = vector.shape_cast %7 : vector<16x32xf32> to vector<2x8x32xf32>
    %9 = arith.truncf %8 : vector<2x8x32xf32> to vector<2x8x32xbf16>
    %c0_6 = arith.constant 0 : index
    %c0_7 = arith.constant 0 : index
    %10 = vector.load %arg3[%c0_6, %c0_7] : memref<32x32xbf16, #tpu.memory_space<vmem>>, vector<32x32xbf16>
    %cst_8 = arith.constant dense<0.000000e+00> : vector<16x32xf32>
    %11 = tpu.matmul %2, %10, %cst_8 {dimension_numbers = #tpu.dot_dimension_numbers<[1], [0], [0], [1], [0, 0, 1, 1], [], []>} : vector<16x32xbf16>, vector<32x32xbf16>, vector<16x32xf32> -> vector<16x32xf32>
    %c0_9 = arith.constant 0 : index
    %c0_10 = arith.constant 0 : index
    %12 = vector.load %arg6[%c0_9, %c0_10] : memref<1x32xf32, #tpu.memory_space<vmem>>, vector<1x32xf32>
    %13 = vector.broadcast %12 : vector<1x32xf32> to vector<16x32xf32>
    %14 = arith.addf %11, %13 : vector<16x32xf32>
    %15 = vector.shape_cast %14 : vector<16x32xf32> to vector<2x8x32xf32>
    %16 = arith.truncf %15 : vector<2x8x32xf32> to vector<2x8x32xbf16>
    %c0_11 = arith.constant 0 : index
    %c0_12 = arith.constant 0 : index
    %17 = vector.load %arg4[%c0_11, %c0_12] : memref<32x32xbf16, #tpu.memory_space<vmem>>, vector<32x32xbf16>
    %cst_13 = arith.constant dense<0.000000e+00> : vector<16x32xf32>
    %18 = tpu.matmul %2, %17, %cst_13 {dimension_numbers = #tpu.dot_dimension_numbers<[1], [0], [0], [1], [0, 0, 1, 1], [], []>} : vector<16x32xbf16>, vector<32x32xbf16>, vector<16x32xf32> -> vector<16x32xf32>
    %c0_14 = arith.constant 0 : index
    %c0_15 = arith.constant 0 : index
    %19 = vector.load %arg7[%c0_14, %c0_15] : memref<1x32xf32, #tpu.memory_space<vmem>>, vector<1x32xf32>
    %20 = vector.broadcast %19 : vector<1x32xf32> to vector<16x32xf32>
    %21 = arith.addf %18, %20 : vector<16x32xf32>
    %22 = vector.shape_cast %21 : vector<16x32xf32> to vector<2x8x32xf32>
    %23 = arith.truncf %22 : vector<2x8x32xf32> to vector<2x8x32xbf16>
    "tpu.trace_start"() <{level = 10 : i32, message = "bqd,bkd->bqk"}> : () -> ()
    %cst_16 = arith.constant dense<0.000000e+00> : vector<2x8x8xf32>
    %24 = tpu.matmul %9, %16, %cst_16 {dimension_numbers = #tpu.dot_dimension_numbers<[2], [2], [1], [1], [0, 0, 0, 1, 1, 1], [0], [0]>} : vector<2x8x32xbf16>, vector<2x8x32xbf16>, vector<2x8x8xf32> -> vector<2x8x8xf32>
    "tpu.trace_stop"() : () -> ()
    %cst_17 = arith.constant 0.176776692 : f32
    %25 = vector.broadcast %cst_17 : f32 to vector<2x8x8xf32>
    %26 = arith.mulf %24, %25 : vector<2x8x8xf32>
    %cst_18 = arith.constant dense<0xFF800000> : vector<2x8xf32>
    %27 = vector.multi_reduction <maximumf>, %26, %cst_18 [2] : vector<2x8x8xf32> to vector<2x8xf32>
    %28 = vector.shape_cast %27 : vector<2x8xf32> to vector<2x8x1xf32>
    %29 = vector.broadcast %28 : vector<2x8x1xf32> to vector<2x8x8xf32>
    %30 = arith.subf %26, %29 : vector<2x8x8xf32>
    %31 = math.exp %30 : vector<2x8x8xf32>
    %cst_19 = arith.constant dense<0.000000e+00> : vector<2x8xf32>
    %32 = vector.multi_reduction <add>, %31, %cst_19 [2] : vector<2x8x8xf32> to vector<2x8xf32>
    %33 = vector.shape_cast %32 : vector<2x8xf32> to vector<2x8x1xf32>
    %34 = tpu.reciprocal %33 {approx = true} : vector<2x8x1xf32> -> vector<2x8x1xf32>
    %35 = vector.broadcast %34 : vector<2x8x1xf32> to vector<2x8x8xf32>
    %36 = arith.mulf %31, %35 : vector<2x8x8xf32>
    %37 = arith.truncf %36 : vector<2x8x8xf32> to vector<2x8x8xbf16>
    "tpu.trace_start"() <{level = 10 : i32, message = "bqk,bkd->bqd"}> : () -> ()
    %cst_20 = arith.constant dense<0.000000e+00> : vector<2x8x32xf32>
    %38 = tpu.matmul %37, %23, %cst_20 {dimension_numbers = #tpu.dot_dimension_numbers<[2], [1], [1], [2], [0, 0, 0, 1, 1, 2], [0], [0]>} : vector<2x8x8xbf16>, vector<2x8x32xbf16>, vector<2x8x32xf32> -> vector<2x8x32xf32>
    "tpu.trace_stop"() : () -> ()
    %39 = vector.shape_cast %38 : vector<2x8x32xf32> to vector<16x32xf32>
    %40 = arith.truncf %39 : vector<16x32xf32> to vector<16x32xbf16>
    %c0_21 = arith.constant 0 : index
    %c0_22 = arith.constant 0 : index
    %41 = vector.load %arg8[%c0_21, %c0_22] : memref<32x32xbf16, #tpu.memory_space<vmem>>, vector<32x32xbf16>
    %cst_23 = arith.constant dense<0.000000e+00> : vector<16x32xf32>
    %42 = tpu.matmul %40, %41, %cst_23 {dimension_numbers = #tpu.dot_dimension_numbers<[1], [0], [0], [1], [0, 0, 1, 1], [], []>} : vector<16x32xbf16>, vector<32x32xbf16>, vector<16x32xf32> -> vector<16x32xf32>
    %c0_24 = arith.constant 0 : index
    %c0_25 = arith.constant 0 : index
    %43 = vector.load %arg9[%c0_24, %c0_25] : memref<1x32xf32, #tpu.memory_space<vmem>>, vector<1x32xf32>
    %44 = vector.broadcast %43 : vector<1x32xf32> to vector<16x32xf32>
    %45 = arith.addf %42, %44 : vector<16x32xf32>
    %46 = vector.shape_cast %0 : vector<2x8x32xf32> to vector<16x32xf32>
    %47 = arith.addf %46, %45 : vector<16x32xf32>
    %c0_26 = arith.constant 0 : index
    %c0_27 = arith.constant 0 : index
    %48 = vector.load %arg10[%c0_26, %c0_27] : memref<1x32xf32, #tpu.memory_space<vmem>>, vector<1x32xf32>
    %c0_28 = arith.constant 0 : index
    %c0_29 = arith.constant 0 : index
    %49 = vector.load %arg11[%c0_28, %c0_29] : memref<1x32xf32, #tpu.memory_space<vmem>>, vector<1x32xf32>
    %cst_30 = arith.constant dense<0.000000e+00> : vector<16xf32>
    %50 = vector.multi_reduction <add>, %47, %cst_30 [1] : vector<16x32xf32> to vector<16xf32>
    %51 = vector.shape_cast %50 : vector<16xf32> to vector<16x1xf32>
    %cst_31 = arith.constant 3.200000e+01 : f32
    %52 = vector.broadcast %cst_31 : f32 to vector<16x1xf32>
    %53 = arith.divf %51, %52 : vector<16x1xf32>
    %54 = vector.broadcast %53 : vector<16x1xf32> to vector<16x32xf32>
    %55 = arith.subf %47, %54 : vector<16x32xf32>
    %56 = arith.mulf %55, %55 : vector<16x32xf32>
    %cst_32 = arith.constant dense<0.000000e+00> : vector<16xf32>
    %57 = vector.multi_reduction <add>, %56, %cst_32 [1] : vector<16x32xf32> to vector<16xf32>
    %58 = vector.shape_cast %57 : vector<16xf32> to vector<16x1xf32>
    %cst_33 = arith.constant 3.200000e+01 : f32
    %59 = vector.broadcast %cst_33 : f32 to vector<16x1xf32>
    %60 = arith.divf %58, %59 : vector<16x1xf32>
    %cst_34 = arith.constant 9.99999974E-6 : f32
    %61 = vector.broadcast %cst_34 : f32 to vector<16x1xf32>
    %62 = arith.addf %60, %61 : vector<16x1xf32>
    %63 = math.rsqrt %62 : vector<16x1xf32>
    %64 = vector.broadcast %63 : vector<16x1xf32> to vector<16x32xf32>
    %65 = arith.mulf %55, %64 : vector<16x32xf32>
    %66 = vector.broadcast %48 : vector<1x32xf32> to vector<16x32xf32>
    %67 = arith.mulf %65, %66 : vector<16x32xf32>
    %68 = vector.broadcast %49 : vector<1x32xf32> to vector<16x32xf32>
    %69 = arith.addf %67, %68 : vector<16x32xf32>
    %70 = arith.truncf %69 : vector<16x32xf32> to vector<16x32xbf16>
    %c0_35 = arith.constant 0 : index
    %c0_36 = arith.constant 0 : index
    %c0_37 = arith.constant 0 : index
    %71 = vector.load %arg12[%c0_35, %c0_36, %c0_37] : memref<1x32x128xbf16, #tpu.memory_space<vmem>>, vector<1x32x128xbf16>
    %72 = vector.shape_cast %71 : vector<1x32x128xbf16> to vector<32x128xbf16>
    %c0_38 = arith.constant 0 : index
    %c0_39 = arith.constant 0 : index
    %c0_40 = arith.constant 0 : index
    %73 = vector.load %arg13[%c0_38, %c0_39, %c0_40] : memref<1x1x128xf32, #tpu.memory_space<vmem>>, vector<1x1x128xf32>
    %74 = vector.shape_cast %73 : vector<1x1x128xf32> to vector<1x128xf32>
    %c0_41 = arith.constant 0 : index
    %c0_42 = arith.constant 0 : index
    %c0_43 = arith.constant 0 : index
    %75 = vector.load %arg14[%c0_41, %c0_42, %c0_43] : memref<1x128x32xbf16, #tpu.memory_space<vmem>>, vector<1x128x32xbf16>
    %76 = vector.shape_cast %75 : vector<1x128x32xbf16> to vector<128x32xbf16>
    %cst_44 = arith.constant dense<0.000000e+00> : vector<16x128xf32>
    %77 = tpu.matmul %70, %72, %cst_44 {dimension_numbers = #tpu.dot_dimension_numbers<[1], [0], [0], [1], [0, 0, 1, 1], [], []>} : vector<16x32xbf16>, vector<32x128xbf16>, vector<16x128xf32> -> vector<16x128xf32>
    %78 = vector.broadcast %74 : vector<1x128xf32> to vector<16x128xf32>
    %79 = arith.addf %77, %78 : vector<16x128xf32>
    %cst_45 = arith.constant 0.000000e+00 : f32
    %80 = vector.broadcast %cst_45 : f32 to vector<16x128xf32>
    %81 = arith.maximumf %79, %80 : vector<16x128xf32>
    %82 = arith.truncf %81 : vector<16x128xf32> to vector<16x128xbf16>
    %cst_46 = arith.constant dense<0.000000e+00> : vector<16x32xf32>
    %83 = tpu.matmul %82, %76, %cst_46 {dimension_numbers = #tpu.dot_dimension_numbers<[1], [0], [0], [1], [0, 0, 1, 1], [], []>} : vector<16x128xbf16>, vector<128x32xbf16>, vector<16x32xf32> -> vector<16x32xf32>
    %c0_47 = arith.constant 0 : index
    %c0_48 = arith.constant 0 : index
    %84 = vector.load %arg15[%c0_47, %c0_48] : memref<1x32xf32, #tpu.memory_space<vmem>>, vector<1x32xf32>
    %85 = vector.broadcast %84 : vector<1x32xf32> to vector<16x32xf32>
    %86 = arith.addf %83, %85 : vector<16x32xf32>
    %87 = arith.addf %69, %86 : vector<16x32xf32>
    %c0_49 = arith.constant 0 : index
    %c0_50 = arith.constant 0 : index
    %88 = vector.load %arg16[%c0_49, %c0_50] : memref<1x32xf32, #tpu.memory_space<vmem>>, vector<1x32xf32>
    %c0_51 = arith.constant 0 : index
    %c0_52 = arith.constant 0 : index
    %89 = vector.load %arg17[%c0_51, %c0_52] : memref<1x32xf32, #tpu.memory_space<vmem>>, vector<1x32xf32>
    %cst_53 = arith.constant dense<0.000000e+00> : vector<16xf32>
    %90 = vector.multi_reduction <add>, %87, %cst_53 [1] : vector<16x32xf32> to vector<16xf32>
    %91 = vector.shape_cast %90 : vector<16xf32> to vector<16x1xf32>
    %cst_54 = arith.constant 3.200000e+01 : f32
    %92 = vector.broadcast %cst_54 : f32 to vector<16x1xf32>
    %93 = arith.divf %91, %92 : vector<16x1xf32>
    %94 = vector.broadcast %93 : vector<16x1xf32> to vector<16x32xf32>
    %95 = arith.subf %87, %94 : vector<16x32xf32>
    %96 = arith.mulf %95, %95 : vector<16x32xf32>
    %cst_55 = arith.constant dense<0.000000e+00> : vector<16xf32>
    %97 = vector.multi_reduction <add>, %96, %cst_55 [1] : vector<16x32xf32> to vector<16xf32>
    %98 = vector.shape_cast %97 : vector<16xf32> to vector<16x1xf32>
    %cst_56 = arith.constant 3.200000e+01 : f32
    %99 = vector.broadcast %cst_56 : f32 to vector<16x1xf32>
    %100 = arith.divf %98, %99 : vector<16x1xf32>
    %cst_57 = arith.constant 9.99999974E-6 : f32
    %101 = vector.broadcast %cst_57 : f32 to vector<16x1xf32>
    %102 = arith.addf %100, %101 : vector<16x1xf32>
    %103 = math.rsqrt %102 : vector<16x1xf32>
    %104 = vector.broadcast %103 : vector<16x1xf32> to vector<16x32xf32>
    %105 = arith.mulf %95, %104 : vector<16x32xf32>
    %106 = vector.broadcast %88 : vector<1x32xf32> to vector<16x32xf32>
    %107 = arith.mulf %105, %106 : vector<16x32xf32>
    %108 = vector.broadcast %89 : vector<1x32xf32> to vector<16x32xf32>
    %109 = arith.addf %107, %108 : vector<16x32xf32>
    %110 = vector.shape_cast %109 : vector<16x32xf32> to vector<2x8x32xf32>
    %c0_58 = arith.constant 0 : index
    %c0_59 = arith.constant 0 : index
    %c0_60 = arith.constant 0 : index
    %111 = vector.load %arg18[%c0_58, %c0_59, %c0_60] : memref<2x8x32xf32, #tpu.memory_space<vmem>>, vector<2x8x32xf32>
    tpu.vector_store %arg18[%c0_58, %c0_59, %c0_60], %110 {strides = array<i32>} : memref<2x8x32xf32, #tpu.memory_space<vmem>>, vector<2x8x32xf32>,
    return
  }
  func.func @transform_0(%arg0: i32) -> (i32, i32, i32) {
    %c0_i32 = arith.constant 0 : i32
    %c0_i32_0 = arith.constant 0 : i32
    %c0_i32_1 = arith.constant 0 : i32
    return %arg0, %c0_i32, %c0_i32_0 : i32, i32, i32
  }
  func.func @transform_1(%arg0: i32) -> (i32, i32) {
    %c0_i32 = arith.constant 0 : i32
    %c0_i32_0 = arith.constant 0 : i32
    %c0_i32_1 = arith.constant 0 : i32
    return %c0_i32, %c0_i32_0 : i32, i32
  }
  func.func @transform_2(%arg0: i32) -> (i32, i32) {
    %c0_i32 = arith.constant 0 : i32
    %c0_i32_0 = arith.constant 0 : i32
    %c0_i32_1 = arith.constant 0 : i32
    return %c0_i32, %c0_i32_0 : i32, i32
  }
  func.func @transform_3(%arg0: i32) -> (i32, i32) {
    %c0_i32 = arith.constant 0 : i32
    %c0_i32_0 = arith.constant 0 : i32
    %c0_i32_1 = arith.constant 0 : i32
    return %c0_i32, %c0_i32_0 : i32, i32
  }
  func.func @transform_4(%arg0: i32) -> (i32, i32) {
    %c0_i32 = arith.constant 0 : i32
    %c0_i32_0 = arith.constant 0 : i32
    %c0_i32_1 = arith.constant 0 : i32
    return %c0_i32, %c0_i32_0 : i32, i32
  }
  func.func @transform_5(%arg0: i32) -> (i32, i32) {
    %c0_i32 = arith.constant 0 : i32
    %c0_i32_0 = arith.constant 0 : i32
    %c0_i32_1 = arith.constant 0 : i32
    return %c0_i32, %c0_i32_0 : i32, i32
  }
  func.func @transform_6(%arg0: i32) -> (i32, i32) {
    %c0_i32 = arith.constant 0 : i32
    %c0_i32_0 = arith.constant 0 : i32
    %c0_i32_1 = arith.constant 0 : i32
    return %c0_i32, %c0_i32_0 : i32, i32
  }
  func.func @transform_7(%arg0: i32) -> (i32, i32) {
    %c0_i32 = arith.constant 0 : i32
    %c0_i32_0 = arith.constant 0 : i32
    %c0_i32_1 = arith.constant 0 : i32
    return %c0_i32, %c0_i32_0 : i32, i32
  }
  func.func @transform_8(%arg0: i32) -> (i32, i32) {
    %c0_i32 = arith.constant 0 : i32
    %c0_i32_0 = arith.constant 0 : i32
    %c0_i32_1 = arith.constant 0 : i32
    return %c0_i32, %c0_i32_0 : i32, i32
  }
  func.func @transform_9(%arg0: i32) -> (i32, i32) {
    %c0_i32 = arith.constant 0 : i32
    %c0_i32_0 = arith.constant 0 : i32
    %c0_i32_1 = arith.constant 0 : i32
    return %c0_i32, %c0_i32_0 : i32, i32
  }
  func.func @transform_10(%arg0: i32) -> (i32, i32) {
    %c0_i32 = arith.constant 0 : i32
    %c0_i32_0 = arith.constant 0 : i32
    %c0_i32_1 = arith.constant 0 : i32
    return %c0_i32, %c0_i32_0 : i32, i32
  }
  func.func @transform_11(%arg0: i32) -> (i32, i32, i32) {
    %c0_i32 = arith.constant 0 : i32
    %c0_i32_0 = arith.constant 0 : i32
    %c0_i32_1 = arith.constant 0 : i32
    %c0_i32_2 = arith.constant 0 : i32
    return %c0_i32, %c0_i32_0, %c0_i32_1 : i32, i32, i32
  }
  func.func @transform_12(%arg0: i32) -> (i32, i32, i32) {
    %c0_i32 = arith.constant 0 : i32
    %c0_i32_0 = arith.constant 0 : i32
    %c0_i32_1 = arith.constant 0 : i32
    %c0_i32_2 = arith.constant 0 : i32
    return %c0_i32, %c0_i32_0, %c0_i32_1 : i32, i32, i32
  }
  func.func @transform_13(%arg0: i32) -> (i32, i32, i32) {
    %c0_i32 = arith.constant 0 : i32
    %c0_i32_0 = arith.constant 0 : i32
    %c0_i32_1 = arith.constant 0 : i32
    %c0_i32_2 = arith.constant 0 : i32
    return %c0_i32, %c0_i32_0, %c0_i32_1 : i32, i32, i32
  }
  func.func @transform_14(%arg0: i32) -> (i32, i32) {
    %c0_i32 = arith.constant 0 : i32
    %c0_i32_0 = arith.constant 0 : i32
    %c0_i32_1 = arith.constant 0 : i32
    return %c0_i32, %c0_i32_0 : i32, i32
  }
  func.func @transform_15(%arg0: i32) -> (i32, i32) {
    %c0_i32 = arith.constant 0 : i32
    %c0_i32_0 = arith.constant 0 : i32
    %c0_i32_1 = arith.constant 0 : i32
    return %c0_i32, %c0_i32_0 : i32, i32
  }
  func.func @transform_16(%arg0: i32) -> (i32, i32) {
    %c0_i32 = arith.constant 0 : i32
    %c0_i32_0 = arith.constant 0 : i32
    %c0_i32_1 = arith.constant 0 : i32
    return %c0_i32, %c0_i32_0 : i32, i32
  }
  func.func @transform_17(%arg0: i32) -> (i32, i32, i32) {
    %c0_i32 = arith.constant 0 : i32
    %c0_i32_0 = arith.constant 0 : i32
    %c0_i32_1 = arith.constant 0 : i32
    return %arg0, %c0_i32, %c0_i32_0 : i32, i32, i32
  }
}

</mosaic_0001>

<bundles_post_ra>
// kernel: tpu_custom_call.1
= control target key start
LH: loop header
LB: loop body
LE: loop exit
PB: predicated region body
PF: predicated region fallthrough
CT: control target
= control target key end

     0   :  { %s1465_s0 = inlined_call_operand.vmem [shape: f32[2,8,32], index: 0, kind: input, shape index: {}]   ;;  %s1466_s1 = inlined_call_operand.vmem [shape: bf16[32,32], index: 1, kind: input, shape index: {}]   ;;  %s1467_s2 = inlined_call_operand.vmem [shape: bf16[32,32], index: 2, kind: input, shape index: {}]   ;;  %s1468_s3 = inlined_call_operand.vmem [shape: bf16[32,32], index: 3, kind: input, shape index: {}]   ;;  %s1469_s4 = inlined_call_operand.vmem [shape: f32[1,32], index: 4, kind: input, shape index: {}]   ;;  %s1470_s5 = inlined_call_operand.vmem [shape: f32[1,32], index: 5, kind: input, shape index: {}]   ;;  %s1471_s6 = inlined_call_operand.hbm [shape: f32[1,32], index: 6, kind: input, shape index: {}]   ;;  %s1472_s7 = inlined_call_operand.vmem [shape: bf16[32,32], index: 7, kind: input, shape index: {}]   ;;  %s1473_s8 = inlined_call_operand.hbm [shape: f32[1,32], index: 8, kind: input, shape index: {}]   ;;  %s1474_s9 = inlined_call_operand.hbm [shape: f32[1,32], index: 9, kind: input, shape index: {}]   ;;  %s1475_s10 = inlined_call_operand.vmem [shape: f32[1,32], index: 10, kind: input, shape index: {}]   ;;  %s1476_s11 = inlined_call_operand.vmem [shape: bf16[1,32,128], index: 11, kind: input, shape index: {}]   ;;  %s1477_s12 = inlined_call_operand.vmem [shape: f32[1,1,128], index: 12, kind: input, shape index: {}]   ;;  %s1478_s13 = inlined_call_operand.vmem [shape: bf16[1,128,32], index: 13, kind: input, shape index: {}]   ;;  %s1479_s14 = inlined_call_operand.vmem [shape: f32[1,32], index: 14, kind: input, shape index: {}]   ;;  %s1480_s15 = inlined_call_operand.vmem [shape: f32[1,32], index: 15, kind: input, shape index: {}]   ;;  %s1481_s16 = inlined_call_operand.vmem [shape: f32[1,32], index: 16, kind: input, shape index: {}]   ;;  %s1482_s17 = inlined_call_operand.hbm [shape: f32[2,8,32], index: 17, kind: output, shape index: {}]  }
   0x1   :  { %1485 = sst [smem:[#allocation12_spill]] %s1465_s0 }
   0x2   :  { %1486 = sst [smem:[#allocation13_spill]] %s1466_s1 }
   0x3   :  { %22 = vsyncpa [#allocation3], 0 }
   0x4   :  { %23 = vsyncpa [#allocation6], 0 }
   0x5   :  { %24 = vsyncpa [#allocation4], 0  ;;  %s1163_s24 = smov [#allocation5]   ;;  %s1164_s26 = smov [#allocation2]  }
   0x6   :  { %s55_s25 = sshll.u32 %s1163_s24, 4  ;;  %s43_s27 = sshll.u32 %s1164_s26, 4  ;;  %s56_s25 = int_to_ptr.vmem [resolvable:$true] %s55_s25  ;;  %s44_s27 = int_to_ptr.vmem [resolvable:$true] %s43_s27 }
   0x7   :  { %s1069_s0 = scalar_lea.hbm %s1473_s8, 16 }
   0x8   :  { %p1070_p0 = scmp.ne.s32.totalorder %s1473_s8, %s1069_s0  ;;  %p1073_p1 = scmp.lt.u32.totalorder %s1069_s0, %s1473_s8 }
   0xa   :  { %p1075_p2 = pnand %p1073_p1, %p1070_p0 }
   0xc   :  { %1078 = shalt.err (!%p1075_p2)
}
   0xd   :  { %s1079_s20 = scalar_lea.vmem %s56_s25, 16  ;;  %s1083_s21 = scalar_lea.vmem %s56_s25, 32 }
   0xe   :  { %p1080_p3 = scmp.ne.s32.totalorder %s56_s25, %s1079_s20  ;;  %p1084_p4 = scmp.lt.s32.totalorder %s56_s25, %s56_s25 }
   0xf   :  { %p1085_p5 = scmp.lt.s32.totalorder %s1083_s21, %s1079_s20 }
  0x11   :  { %p1086_p6 = por %p1085_p5, %p1084_p4 }
  0x13   :  { %p1087_p7 = pnand %p1086_p6, %p1080_p3 }
  0x15   :  { %1090 = shalt.err (!%p1087_p7)
}
  0x16   :  { %58 = dma.hbm_to_vmem [thread:$0]  %s1473_s8, 16, %s56_s25, [#allocation6]  }
  0x17   :  { %s1091_s28 = scalar_lea.hbm %s1471_s6, 16 }
  0x18   :  { %p1092_p8 = scmp.ne.s32.totalorder %s1471_s6, %s1091_s28  ;;  %p1095_p9 = scmp.lt.u32.totalorder %s1091_s28, %s1471_s6 }
  0x1a   :  { %p1097_p10 = pnand %p1095_p9, %p1092_p8 }
  0x1c   :  { %1100 = shalt.err (!%p1097_p10)
}
  0x1d   :  { %s1101_s19 = scalar_lea.vmem %s44_s27, 16  ;;  %s1105_s1 = scalar_lea.vmem %s44_s27, 32 }
  0x1e   :  { %p1102_p11 = scmp.ne.s32.totalorder %s44_s27, %s1101_s19  ;;  %p1106_p12 = scmp.lt.s32.totalorder %s44_s27, %s44_s27 }
  0x1f   :  { %p1107_p13 = scmp.lt.s32.totalorder %s1105_s1, %s1101_s19 }
  0x21   :  { %p1108_p0 = por %p1107_p13, %p1106_p12 }
  0x23   :  { %p1109_p1 = pnand %p1108_p0, %p1102_p11 }
  0x25   :  { %1112 = shalt.err (!%p1109_p1)
}
  0x26   :  { %46 = dma.hbm_to_vmem [thread:$0]  %s1471_s6, 16, %s44_s27, [#allocation3]  }
  0x27   :  { %s1165_s20 = smov [#allocation7]   ;;  %s1113_s24 = scalar_lea.hbm %s1474_s9, 16 }
  0x28   :  { %s65_s21 = sshll.u32 %s1165_s20, 4  ;;  %p1114_p2 = scmp.ne.s32.totalorder %s1474_s9, %s1113_s24  ;;  %s66_s21 = int_to_ptr.vmem [resolvable:$true] %s65_s21 }
  0x29   :  { %p1117_p3 = scmp.lt.u32.totalorder %s1113_s24, %s1474_s9 }
  0x2b   :  { %p1119_p4 = pnand %p1117_p3, %p1114_p2 }
  0x2d   :  { %1122 = shalt.err (!%p1119_p4)
}
  0x2e   :  { %s1123_s30 = scalar_lea.vmem %s66_s21, 16  ;;  %s1127_s6 = scalar_lea.vmem %s66_s21, 32 }
  0x2f   :  { %p1124_p5 = scmp.ne.s32.totalorder %s66_s21, %s1123_s30  ;;  %p1128_p6 = scmp.lt.s32.totalorder %s66_s21, %s66_s21 }
  0x30   :  { %p1129_p7 = scmp.lt.s32.totalorder %s1127_s6, %s1123_s30 }
  0x32   :  { %p1130_p8 = por %p1129_p7, %p1128_p6 }
  0x34   :  { %p1131_p9 = pnand %p1130_p8, %p1124_p5 }
  0x36   :  { %1134 = shalt.err (!%p1131_p9)
}
  0x37   :  { %68 = dma.hbm_to_vmem [thread:$0]  %s1474_s9, 16, %s66_s21, [#allocation6]  }
  0x38   :  { %1157 = dma.done.wait [#allocation3], 16  }
  0x39   :  { %1158 = vsyncadd [#allocation3], 4294967280 }
  0x3a   :  { %1159 = dma.done.wait [#allocation6], 32  }
  0x3b   :  { %1160 = vsyncadd [#allocation6], 4294967264  ;;  %v1166_v0 = vmov 0.0   ;;  %vm1167_vm0 = vmmov 0   ;;  %s1487_s8 = sld [smem:[#allocation13_spill]]  ;;  %s1488_s22 = sld [smem:[#allocation12_spill]] }
  0x3c   :  { %943 = vmatprep.subr.bf16.mxu0 %v1166_v0  ;;  %947 = vmatprep.mubr.msk.bf16.mxu0 %vm1167_vm0, %v1166_v0  ;;  %vm119_vm1 = vcmask 261120   ;;  %v1037_v5 = vld [vmem:[%s1467_s2] sm:$0xff]   ;;  %v1038_v7 = vld [vmem:[%s1467_s2 + $0x8] sm:$0xff]   ;;  %vm420_vm2 = vcmask 1043456   ;;  %vm392_vm3 = vcmask 64512   ;;  %s1168_s20 = smov [#allocation8]  }
  0x3d   :  { %967 = vmatprep.subr.bf16.mxu1 %v1166_v0  ;;  %969 = vmatprep.mubr.msk.bf16.mxu1 %vm1167_vm0, %v1166_v0  ;;  %v1039_v8 = vld [vmem:[%s1468_s3] sm:$0xff]   ;;  %v1040_v9 = vld [vmem:[%s1468_s3 + $0x8] sm:$0xff]   ;;  %s861_s21 = sshll.u32 %s1168_s20, 4  ;;  %s862_s21 = int_to_ptr.vmem [resolvable:$true] %s861_s21 }
  0x3e   :  { %v878_v14 = vld [vmem:[%s1470_s5] ss:$0 sm:$0xff]  ;;  %p1140_p11 = scmp.lt.s32.totalorder %s862_s21, %s862_s21 }
  0x3f   :  { %v874_v22 = vld [vmem:[%s1469_s4] ss:$0 sm:$0xff] }
  0x40   :  { %v882_v30 = vld [vmem:[#allocation2] ss:$0 sm:$0xff] }
  0x41   :  { %v1035_v1 = vld [vmem:[%s1487_s8] sm:$0xff]   ;;  %v1036_v2 = vld [vmem:[%s1487_s8 + $0x8] sm:$0xff]  }
  0x42   :  { %944 = vmatpush3.bf16.msra.mxu0 %v1035_v1  ;;  %v1312_v3 = vld [vmem:[%s1488_s22] sm:$0xff]  ;;  %v1317_v4 = vld [vmem:[%s1488_s22 + $0x8] sm:$0xff]  ;;  %s1135_s22 = scalar_lea.vmem %s862_s21, 256 }
  0x43   :  { %945 = vmatprep.subr.bf16.mxu0 %v1166_v0  ;;  %v95_v6 = vpack.c.bf16 %v1317_v4, %v1312_v3  ;;  %p1136_p10 = scmp.ne.s32.totalorder %s862_s21, %s1135_s22  ;;  %p1141_p12 = scmp.lt.s32.totalorder %s1135_s22, %s1135_s22 }
  0x45   :  { %p1142_p13 = por %p1141_p12, %p1140_p11 }
  0x46   :  { %946 = vmatpush3.bf16.msra.mxu0 %v1036_v2 }
  0x47   :  { %951 = vmatprep.subr.bf16.mxu0 %v1166_v0  ;;  %p1143_p0 = pnand %p1142_p13, %p1136_p10 }
  0x49   :  { %948 = vmatmul.mubr.msk.bf16.vlgmr.msra.gmra.mrb[0].mxu0 %vm119_vm1, %v95_v6 }
  0x4a   :  { %952 = vmatpush3.bf16.msra.mxu0 %v1037_v5  ;;  %955 = vmatprep.mubr.msk.bf16.mxu0 %vm1167_vm0, %v1166_v0 }
  0x4b   :  { %953 = vmatprep.subr.bf16.mxu0 %v1166_v0 }
  0x4e   :  { %954 = vmatpush3.bf16.msra.mxu0 %v1038_v7 }
  0x4f   :  { %959 = vmatprep.subr.bf16.mxu0 %v1166_v0 }
  0x51   :  { %956 = vmatmul.mubr.msk.bf16.vlgmr.msra.gmra.mrb[4].mxu0 %vm119_vm1, %v95_v6 }
  0x52   :  { %963 = vmatprep.mubr.msk.bf16.mxu0 %vm1167_vm0, %v1166_v0  ;;  %960 = vmatpush3.bf16.msra.mxu0 %v1039_v8 }
  0x53   :  { %961 = vmatprep.subr.bf16.mxu0 %v1166_v0 }
  0x56   :  { %962 = vmatpush3.bf16.msra.mxu0 %v1040_v9 }
  0x57   :  { %973 = vmatprep.subr.bf16.mxu0 %v1166_v0 }
  0x59   :  { %964 = vmatmul.mubr.msk.bf16.vlgmr.msra.gmra.mrb[8].mxu0 %vm119_vm1, %v95_v6 }
  0x5a   :  { %975 = vmatprep.mubr.msk.bf16.mxu0 %vm1167_vm0, %v1166_v0 }
 0x11c   :  { %v157_v10 = vpop.f32.mrb[0].mxu0 }
 0x11d   :  { %v949_v11 = vpop.f32.mrb[1].mxu0  ;;  %v158_v25 = vadd.f32 %v874_v22, %v157_v10  ;;  %v1041_v10 = vld [vmem:[%s1472_s7] sm:$0xff]  }
 0x11e   :  { %v160_v12 = vpop.f32.mrb[2].mxu0  ;;  %v1042_v11 = vld [vmem:[%s1472_s7 + $0x8] sm:$0xff]  }
 0x11f   :  { %v950_v13 = vpop.f32.mrb[3].mxu0  ;;  %v161_v27 = vadd.f32 %v874_v22, %v160_v12  ;;  %v164_v28 = vpack.c.bf16 %v158_v25, %v158_v25 }
 0x121   :  { %v165_v29 = vpack.c.bf16 %v161_v27, %v161_v27 }
 0x124   :  { %v223_v15 = vpop.f32.mrb[4].mxu0 }
 0x125   :  { %v224_v16 = vadd.f32 %v878_v14, %v223_v15  ;;  %v957_v17 = vpop.f32.mrb[5].mxu0 }
 0x126   :  { %v226_v18 = vpop.f32.mrb[6].mxu0 }
 0x127   :  { %v230_v19 = vpack.c.bf16 %v224_v16, %v224_v16  ;;  %v227_v20 = vadd.f32 %v878_v14, %v226_v18  ;;  %v958_v21 = vpop.f32.mrb[7].mxu0 }
 0x128   :  { %v890_v21 = vld [vmem:[#allocation5] ss:$0 sm:$0xff] }
 0x129   :  { %v231_v23 = vpack.c.bf16 %v227_v20, %v227_v20  ;;  %v302_v24 = vsel %vm119_vm1, %v230_v19, 0 }
 0x12a   :  { %968 = vmatpush3.bf16.xpose.msra.mxu1 %v302_v24 }
 0x12b   :  { %v348_v26 = vsel %vm119_vm1, %v231_v23, 0  ;;  %979 = vmatprep.subr.bf16.mxu1 %v1166_v0 }
 0x12c   :  { %974 = vmatpush3.bf16.xpose.msra.mxu0 %v348_v26  ;;  %v289_v31 = vpop.f32.mrb[8].mxu0 }
 0x12d   :  { %985 = vmatprep.subr.bf16.mxu0 %v1166_v0  ;;  %v290_v32 = vadd.f32 %v882_v30, %v289_v31  ;;  %v965_v33 = vpop.f32.mrb[9].mxu0 }
 0x12e   :  { %v292_v34 = vpop.f32.mrb[10].mxu0 }
 0x12f   :  { %v296_v35 = vpack.c.bf16 %v290_v32, %v290_v32  ;;  %v293_v36 = vadd.f32 %v882_v30, %v292_v34  ;;  %v966_v37 = vpop.f32.mrb[11].mxu0 }
 0x131   :  { %970 = vmatmul.mubr.msk.bf16.vlgmr.msra.gmra.mrb[0].mxu1 %vm119_vm1, %v164_v28  ;;  %v422_v38 = vsel %vm420_vm2, %v296_v35, 0  ;;  %v297_v39 = vpack.c.bf16 %v293_v36, %v293_v36 }
 0x132   :  { %981 = vmatprep.mubr.msk.bf16.mxu1 %vm1167_vm0, %v1166_v0  ;;  %980 = vmatpush3.bf16.msra.mxu1 %v422_v38 }
 0x133   :  { %976 = vmatmul.mubr.msk.bf16.vlgmr.msra.gmra.mrb[12].mxu0 %vm119_vm1, %v165_v29  ;;  %v468_v40 = vsel %vm420_vm2, %v297_v39, 0  ;;  %991 = vmatprep.subr.bf16.mxu1 %v1166_v0 }
 0x134   :  { %987 = vmatprep.mubr.msk.bf16.mxu0 %vm1167_vm0, %v1166_v0  ;;  %986 = vmatpush3.bf16.msra.mxu0 %v468_v40 }
 0x135   :  { %999 = vmatprep.subr.bf16.mxu0 %v1166_v0 }
 0x204   :  { %v338_v41 = vpop.f32.mrb[0].mxu1 }
 0x205   :  { %v390_v42 = vmul.f32 0.17677669, %v338_v41  ;;  %v971_v43 = vpop.f32.mrb[1].mxu1  ;;  %v1044_v41 = vld [vmem:[%s1476_s11 + $0x8] sm:$0xff]  }
 0x206   :  { %v341_v44 = vpop.f32.mrb[2].mxu1  ;;  %v384_v45 = vpop.f32.mrb[12].mxu0  ;;  %v1046_v43 = vld [vmem:[%s1478_s13 + $0x8] sm:$0xff]  }
 0x207   :  { %v391_v46 = vmul.f32 0.17677669, %v384_v45  ;;  %v972_v47 = vpop.f32.mrb[3].mxu1  ;;  %v977_v48 = vpop.f32.mrb[13].mxu0  ;;  %v393_v49 = vsel %vm392_vm3, %v390_v42, -inf  ;;  %v1047_v44 = vld [vmem:[%s1478_s13 + $0x10] sm:$0xff]  }
 0x208   :  { %394 = vmax.xlane.f32.xlu0 %v393_v49  ;;  %v387_v50 = vpop.f32.mrb[14].mxu0  ;;  %v1048_v45 = vld [vmem:[%s1478_s13 + $0x18] sm:$0xff]   ;;  %v1050_v47 = vld [vmem:[%s1478_s13 + $0x28] sm:$0xff]  }
 0x209   :  { %v978_v51 = vpop.f32.mrb[15].mxu0  ;;  %v396_v52 = vsel %vm392_vm3, %v391_v46, -inf }
 0x20c   :  { %397 = vmax.xlane.f32.xlu0 %v396_v52 }
 0x295   :  { %v395_v53 = vpop.xlane.xlu0 %394 }
 0x296   :  { %v399_v54 = vsub.f32 %v390_v42, %v395_v53  ;;  %v1045_v42 = vld [vmem:[%s1478_s13] sm:$0xff]  }
 0x298   :  { %v401_v55 = vmul.f32 1.442695, %v399_v54 }
 0x299   :  { %v398_v56 = vpop.xlane.xlu0 %397 }
 0x29a   :  { %1053 = vpow2.f32 %v401_v55  ;;  %v400_v57 = vsub.f32 %v391_v46, %v398_v56  ;;  %v1049_v46 = vld [vmem:[%s1478_s13 + $0x20] sm:$0xff]  }
 0x29b   :  { %v894_v55 = vld [vmem:[#allocation7] ss:$0 sm:$0xff] }
 0x29c   :  { %v403_v58 = vmul.f32 1.442695, %v400_v57 }
 0x29e   :  { %1055 = vpow2.f32 %v403_v58 }
 0x2a4   :  { %v1054_v59 = vpop.eup %1053 }
 0x2a5   :  { %v405_v60 = vsel %vm392_vm3, %v1054_v59, 0.0 }
 0x2a6   :  { %406 = vadd.xlane.f32.xlu1 %v405_v60  ;;  %v895_v60 = vld [vmem:[%s1475_s10] ss:$0 sm:$0xff] }
 0x2a8   :  { %v1056_v61 = vpop.eup %1055 }
 0x2a9   :  { %v408_v62 = vsel %vm392_vm3, %v1056_v61, 0.0 }
 0x2aa   :  { %409 = vadd.xlane.f32.xlu1 %v408_v62 }
 0x333   :  { %v407_v63 = vpop.xlane.xlu1 %406 }
 0x334   :  { %1057 = vrcp.f32 %v407_v63 }
 0x337   :  { %v410_v1 = vpop.xlane.xlu1 %409 }
 0x338   :  { %1059 = vrcp.f32 %v410_v1 }
 0x33e   :  { %v1058_v2 = vpop.eup %1057 }
 0x33f   :  { %v413_v5 = vmul.f32 %v1058_v2, %v1054_v59  ;;  %v1051_v2 = vld [vmem:[%s1478_s13 + $0x30] sm:$0xff]  }
 0x341   :  { %v415_v6 = vpack.c.bf16 %v413_v5, %v413_v5  ;;  %v1052_v5 = vld [vmem:[%s1478_s13 + $0x38] sm:$0xff]  }
 0x342   :  { %v1060_v7 = vpop.eup %1059 }
 0x343   :  { %v414_v8 = vmul.f32 %v1060_v7, %v1056_v61  ;;  %982 = vmatmul.mubr.msk.bf16.vlgmr.msra.gmra.mrb[4].mxu1 %vm392_vm3, %v415_v6  ;;  %v896_v6 = vld [vmem:[%s1477_s12] ss:$0 sm:$0xff] }
 0x344   :  { %995 = vmatprep.mubr.msk.bf16.mxu1 %vm1167_vm0, %v1166_v0  ;;  %992 = vmatpush3.bf16.msra.mxu1 %v1041_v10 }
 0x345   :  { %v416_v9 = vpack.c.bf16 %v414_v8, %v414_v8  ;;  %993 = vmatprep.subr.bf16.mxu1 %v1166_v0 }
 0x347   :  { %988 = vmatmul.mubr.msk.bf16.vlgmr.msra.gmra.mrb[16].mxu0 %vm392_vm3, %v416_v9 }
 0x348   :  { %1003 = vmatprep.mubr.msk.bf16.mxu0 %vm1167_vm0, %v1166_v0  ;;  %994 = vmatpush3.bf16.msra.mxu1 %v1042_v11 }
 0x349   :  { %1007 = vmatprep.subr.bf16.mxu1 %v1166_v0 }
 0x416   :  { %v458_v12 = vpop.f32.mrb[4].mxu1 }
 0x417   :  { %v983_v13 = vpop.f32.mrb[5].mxu1 }
 0x418   :  { %v461_v14 = vpop.f32.mrb[6].mxu1 }
 0x419   :  { %v984_v15 = vpop.f32.mrb[7].mxu1 }
 0x41a   :  { %v504_v16 = vpop.f32.mrb[16].mxu0 }
 0x41b   :  { %v510_v17 = vpack.c.bf16 %v504_v16, %v458_v12  ;;  %v989_v18 = vpop.f32.mrb[17].mxu0 }
 0x41c   :  { %v507_v19 = vpop.f32.mrb[18].mxu0 }
 0x41d   :  { %v990_v20 = vpop.f32.mrb[19].mxu0  ;;  %996 = vmatmul.mubr.msk.bf16.vlgmr.msra.gmra.mrb[8].mxu1 %vm119_vm1, %v510_v17 }
 0x41e   :  { %1023 = vmatprep.mubr.msk.bf16.mxu1 %vm1167_vm0, %v1166_v0  ;;  %1008 = vmatpush3.bf16.msra.mxu1 %v1045_v42 }
 0x41f   :  { %1009 = vmatprep.subr.bf16.mxu1 %v1166_v0 }
 0x422   :  { %1010 = vmatpush3.bf16.msra.mxu1 %v1046_v43 }
 0x423   :  { %1011 = vmatprep.subr.bf16.mxu1 %v1166_v0 }
 0x426   :  { %1012 = vmatpush3.bf16.msra.mxu1 %v1047_v44  ;;  %v910_v44 = vld [vmem:[%s1481_s16] ss:$0 sm:$0xff] }
 0x427   :  { %1013 = vmatprep.subr.bf16.mxu1 %v1166_v0 }
 0x42a   :  { %1014 = vmatpush3.bf16.msra.mxu1 %v1048_v45 }
 0x42b   :  { %1015 = vmatprep.subr.bf16.mxu1 %v1166_v0 }
 0x42e   :  { %1016 = vmatpush3.bf16.msra.mxu1 %v1049_v46 }
 0x42f   :  { %1017 = vmatprep.subr.bf16.mxu1 %v1166_v0 }
 0x432   :  { %1018 = vmatpush3.bf16.msra.mxu1 %v1050_v47 }
 0x433   :  { %1019 = vmatprep.subr.bf16.mxu1 %v1166_v0 }
 0x436   :  { %1020 = vmatpush3.bf16.msra.mxu1 %v1051_v2 }
 0x437   :  { %1021 = vmatprep.subr.bf16.mxu1 %v1166_v0 }
 0x43a   :  { %1022 = vmatpush3.bf16.msra.mxu1 %v1052_v5 }
 0x4f0   :  { %v571_v22 = vpop.f32.mrb[8].mxu1 }
 0x4f1   :  { %v572_v23 = vadd.f32 %v890_v21, %v571_v22  ;;  %v997_v24 = vpop.f32.mrb[9].mxu1 }
 0x4f2   :  { %v574_v25 = vpop.f32.mrb[10].mxu1 }
 0x4f3   :  { %v575_v26 = vadd.f32 %v890_v21, %v574_v25  ;;  %v998_v27 = vpop.f32.mrb[11].mxu1  ;;  %v578_v28 = vadd.f32 %v572_v23, %v1312_v3 }
 0x4f5   :  { %v582_v29 = vsel %vm119_vm1, %v578_v28, 0.0  ;;  %v579_v30 = vadd.f32 %v575_v26, %v1317_v4  ;;  %v1043_v4 = vld [vmem:[%s1476_s11] sm:$0xff]  }
 0x4f6   :  { %583 = vadd.xlane.f32.xlu0 %v582_v29  ;;  %1000 = vmatpush3.bf16.msra.mxu0 %v1043_v4 }
 0x4f7   :  { %v585_v31 = vsel %vm119_vm1, %v579_v30, 0.0  ;;  %1001 = vmatprep.subr.bf16.mxu0 %v1166_v0  ;;  %v900_v0 = vld [vmem:[%s1479_s14] ss:$0 sm:$0xff] }
 0x4f8   :  { %586 = vadd.xlane.f32.xlu1 %v585_v31 }
 0x4fa   :  { %1002 = vmatpush3.bf16.msra.mxu0 %v1044_v41  ;;  %v909_v41 = vld [vmem:[%s1480_s15] ss:$0 sm:$0xff] }
 0x583   :  { %v584_v32 = vpop.xlane.xlu0 %583 }
 0x584   :  { %v589_v33 = vmul.f32 0.03125, %v584_v32 }
 0x585   :  { %v587_v34 = vpop.xlane.xlu1 %586 }
 0x586   :  { %v591_v35 = vsub.f32 %v578_v28, %v589_v33  ;;  %v590_v36 = vmul.f32 0.03125, %v587_v34 }
 0x588   :  { %v592_v37 = vsub.f32 %v579_v30, %v590_v36  ;;  %v593_v38 = vmul.f32 %v591_v35, %v591_v35 }
 0x58a   :  { %v595_v39 = vsel %vm119_vm1, %v593_v38, 0.0  ;;  %v594_v40 = vmul.f32 %v592_v37, %v592_v37 }
 0x58b   :  { %596 = vadd.xlane.f32.xlu0 %v595_v39 }
 0x58c   :  { %v598_v3 = vsel %vm119_vm1, %v594_v40, 0.0 }
 0x58d   :  { %599 = vadd.xlane.f32.xlu1 %v598_v3 }
 0x618   :  { %v597_v48 = vpop.xlane.xlu0 %596 }
 0x619   :  { %v601_v49 = vmul.f32 0.03125, %v597_v48 }
 0x61a   :  { %v600_v50 = vpop.xlane.xlu1 %599 }
 0x61b   :  { %v603_v51 = vadd.f32 1e-05, %v601_v49  ;;  %v602_v52 = vmul.f32 0.03125, %v600_v50 }
 0x61d   :  { %1061 = vrsqrt.f32 %v603_v51  ;;  %v604_v53 = vadd.f32 1e-05, %v602_v52 }
 0x61f   :  { %1063 = vrsqrt.f32 %v604_v53 }
 0x627   :  { %v1062_v54 = vpop.eup %1061 }
 0x628   :  { %v607_v56 = vmul.f32 %v1062_v54, %v591_v35 }
 0x629   :  { %v1064_v57 = vpop.eup %1063 }
 0x62a   :  { %v615_v58 = vmul.f32 %v894_v55, %v607_v56  ;;  %v608_v59 = vmul.f32 %v1064_v57, %v592_v37 }
 0x62c   :  { %v616_v61 = vmul.f32 %v894_v55, %v608_v59  ;;  %v623_v62 = vadd.f32 %v895_v60, %v615_v58 }
 0x62e   :  { %v624_v63 = vadd.f32 %v895_v60, %v616_v61 }
 0x630   :  { %v625_v1 = vpack.c.bf16 %v624_v63, %v623_v62 }
 0x632   :  { %1004 = vmatmul.mubr.msk.bf16.vlgmr.msra.gmra.mrb[20].mxu0 %vm119_vm1, %v625_v1 }
 0x705   :  { %v702_v7 = vpop.f32.mrb[20].mxu0 }
 0x706   :  { %v703_v8 = vadd.f32 %v896_v6, %v702_v7  ;;  %v1005_v9 = vpop.f32.mrb[21].mxu0 }
 0x707   :  { %v705_v10 = vpop.f32.mrb[22].mxu0 }
 0x708   :  { %v706_v11 = vadd.f32 %v896_v6, %v705_v10  ;;  %v1006_v12 = vpop.f32.mrb[23].mxu0  ;;  %v709_v13 = vmax.f32 %v703_v8, 0.0 }
 0x70a   :  { %v710_v14 = vmax.f32 %v706_v11, 0.0 }
 0x70c   :  { %v711_v15 = vpack.c.bf16 %v710_v14, %v709_v13 }
 0x70e   :  { %1024 = vmatmul.mubr.bf16.vlgmr.msra.gmra.mrb[12].mxu1 %v711_v15 }
 0x7e1   :  { %v801_v16 = vpop.f32.mrb[12].mxu1 }
 0x7e2   :  { %v802_v17 = vadd.f32 %v900_v0, %v801_v16  ;;  %v1025_v18 = vpop.f32.mrb[13].mxu1 }
 0x7e3   :  { %v804_v19 = vpop.f32.mrb[14].mxu1 }
 0x7e4   :  { %v805_v20 = vadd.f32 %v900_v0, %v804_v19  ;;  %v1026_v21 = vpop.f32.mrb[15].mxu1  ;;  %v808_v22 = vadd.f32 %v802_v17, %v623_v62 }
 0x7e6   :  { %v812_v23 = vsel %vm119_vm1, %v808_v22, 0.0  ;;  %v809_v24 = vadd.f32 %v805_v20, %v624_v63 }
 0x7e7   :  { %813 = vadd.xlane.f32.xlu0 %v812_v23 }
 0x7e8   :  { %v815_v25 = vsel %vm119_vm1, %v809_v24, 0.0 }
 0x7e9   :  { %816 = vadd.xlane.f32.xlu1 %v815_v25 }
 0x874   :  { %v814_v26 = vpop.xlane.xlu0 %813 }
 0x875   :  { %v818_v27 = vmul.f32 0.03125, %v814_v26 }
 0x876   :  { %v817_v28 = vpop.xlane.xlu1 %816 }
 0x877   :  { %v820_v29 = vsub.f32 %v808_v22, %v818_v27  ;;  %v819_v30 = vmul.f32 0.03125, %v817_v28 }
 0x879   :  { %v821_v31 = vsub.f32 %v809_v24, %v819_v30  ;;  %v822_v32 = vmul.f32 %v820_v29, %v820_v29 }
 0x87b   :  { %v824_v33 = vsel %vm119_vm1, %v822_v32, 0.0  ;;  %v823_v34 = vmul.f32 %v821_v31, %v821_v31 }
 0x87c   :  { %825 = vadd.xlane.f32.xlu0 %v824_v33 }
 0x87d   :  { %v827_v35 = vsel %vm119_vm1, %v823_v34, 0.0 }
 0x87e   :  { %828 = vadd.xlane.f32.xlu1 %v827_v35 }
 0x909   :  { %v826_v36 = vpop.xlane.xlu0 %825 }
 0x90a   :  { %v830_v37 = vmul.f32 0.03125, %v826_v36 }
 0x90b   :  { %v829_v38 = vpop.xlane.xlu1 %828 }
 0x90c   :  { %v832_v39 = vadd.f32 1e-05, %v830_v37  ;;  %v831_v40 = vmul.f32 0.03125, %v829_v38 }
 0x90e   :  { %1065 = vrsqrt.f32 %v832_v39  ;;  %v833_v3 = vadd.f32 1e-05, %v831_v40 }
 0x910   :  { %1067 = vrsqrt.f32 %v833_v3 }
 0x918   :  { %v1066_v4 = vpop.eup %1065 }
 0x919   :  { %v836_v42 = vmul.f32 %v1066_v4, %v820_v29 }
 0x91a   :  { %v1068_v43 = vpop.eup %1067 }
 0x91b   :  { %v844_v45 = vmul.f32 %v909_v41, %v836_v42  ;;  %v837_v46 = vmul.f32 %v1068_v43, %v821_v31 }
 0x91d   :  { %v845_v47 = vmul.f32 %v909_v41, %v837_v46  ;;  %v852_v48 = vadd.f32 %v910_v44, %v844_v45 }
 0x91f   :  { %v853_v49 = vadd.f32 %v910_v44, %v845_v47  ;;  %854 = vst.msk [vmem:[#allocation8] sm:$0xff] %vm119_vm1, %v852_v48 }
 0x921   :  { %855 = vst.msk [vmem:[#allocation8 + $0x8] sm:$0xff] %vm119_vm1, %v853_v49 }
 0x922   :  { %1146 = shalt.err (!%p1143_p0)
}
 0x923   :  { %s1147_s23 = scalar_lea.hbm %s1482_s17, 256 }
 0x924   :  { %p1148_p1 = scmp.ne.s32.totalorder %s1482_s17, %s1147_s23  ;;  %p1151_p2 = scmp.lt.u32.totalorder %s1147_s23, %s1482_s17 }
 0x926   :  { %p1153_p3 = pnand %p1151_p2, %p1148_p1 }
 0x928   :  { %1156 = shalt.err (!%p1153_p3)
}
 0x929   :  { %s1169_s11 = smov 128   ;;  %s1170_s0 = smov 8  }
 0x92a   :  { %867 = dma.vmem_to_hbm [thread:$0]  %s862_s21, 256, %s1482_s17, [#allocation4], %s1169_s11, %s1169_s11, %s1170_s0  }
 0x92b   :  { %1161 = dma.done.wait [#allocation4], 256  }
 0x92c   :  { %1162 = vsyncadd [#allocation4], 4294967040 }
 0x92d   :  { %871 = vsyncpa [#allocation3], 1 }
 0x92e   :  { %872 = vsyncpa [#allocation6], 1 }
 0x92f   :  { %873 = vsyncpa [#allocation4], 1 }

</bundles_post_ra>
